<compile_context>
chip_gen: v7x
topology: tpu7x:2x2x1
jax: 0.10.0
libtpu: 0.0.40
codegen_flags: <defaults>
</compile_context>

<pallas_src>
import functools

import jax
import jax.numpy as jnp
from jax.experimental import pallas as pl
from jax.experimental.pallas import tpu as pltpu

BN_EPS = 1e-5
_LANE = 128


def _round_up(a, m):
    return (a + m - 1) // m * m


def conv_stats_kernel(w_ref, x_ref, mask_ref, y_ref, sum_ref, ssq_ref, *,
                      k, stride, w_in, ohw_acc):
    # w_ref:   (K*K, OC, C)  bf16  - one (OC, C) slab per conv tap
    # x_ref:   (C, HW_pad)   bf16  - one batch, rows flattened (row-major), zero-padded
    # mask_ref:(1, OHW_acc)  f32   - 1.0 on valid (oh, ow) positions, 0.0 elsewhere
    # y_ref:   (OC, OHW_acc) f32   - conv output, position p = oh*W + ow (ow over full W)
    # sum/ssq: (OC, 1)       f32   - per-batch channel sums / sums of squares
    acc = jnp.zeros(y_ref.shape, jnp.float32)
    for kh in range(k):
        for kw in range(k):
            off = kh * w_in + kw                          # static Python int
            if stride == 1:
                xs = x_ref[:, pl.ds(off, ohw_acc)]
            else:
                xs = x_ref[:, pl.ds(off, ohw_acc, stride)]
            acc += jnp.dot(w_ref[kh * k + kw], xs,
                           preferred_element_type=jnp.float32)
    y_ref[...] = acc

    # Per-batch statistics over VALID positions only (mask zeros the padding /
    # out-of-window columns).  Kept in f32.
    yv = acc * mask_ref[...]
    sum_ref[...] = jnp.sum(yv, axis=-1, keepdims=True)
    ssq_ref[...] = jnp.sum(yv * acc, axis=-1, keepdims=True)


@functools.partial(jax.jit, static_argnames="stride")
def conv_bn_forward(x, weight, gamma, beta, stride):
    """x: [N,C,H,W] NCHW, weight: [OC,C,K,K] (torch OIHW), gamma/beta: [OC].

    Reproduces Conv2d(bias=False, padding=0) + training-mode BatchNorm2d
    (batch stats over N,H,W, biased variance, eps=1e-5, affine)."""
    n, c, h, w_in = x.shape
    oc, _, k, _ = weight.shape
    oh = (h - k) // stride + 1
    ow = (w_in - k) // stride + 1

    # Accumulator columns: position p encodes (oh_row, q) with q over the FULL
    # input width W; only q < OW is a real output column.  Pad to 128 lanes.
    ohw_acc = _round_up(oh * w_in, _LANE)

    # Row-flattened input, zero-padded so every shifted window read stays in bounds.
    max_off = (k - 1) * w_in + (k - 1)
    hw_pad = _round_up(max(h * w_in, max_off + stride * (ohw_acc - 1) + 1), _LANE)
    x_flat = x.astype(jnp.bfloat16).reshape(n, c, h * w_in)
    x_flat = jnp.pad(x_flat, ((0, 0), (0, 0), (0, hw_pad - h * w_in)))

    # Weights as (K*K, OC, C): the kernel picks one (OC, C) slab per tap.
    w_taps = jnp.transpose(weight.astype(jnp.bfloat16), (2, 3, 0, 1)).reshape(k * k, oc, c)

    # Valid-column mask for the statistics.
    pos = jnp.arange(ohw_acc, dtype=jnp.int32)
    mask = ((pos < oh * w_in) & ((pos % w_in) < ow)).astype(jnp.float32).reshape(1, ohw_acc)

    kernel = functools.partial(conv_stats_kernel, k=k, stride=stride,
                               w_in=w_in, ohw_acc=ohw_acc)

    # ---- Single Pallas pass: in-kernel conv GEMM + per-batch sum / sumsq --------
    y_flat, sums, ssqs = pl.pallas_call(
        kernel,
        out_shape=(
            jax.ShapeDtypeStruct((n, oc, ohw_acc), jnp.float32),
            jax.ShapeDtypeStruct((n, oc, 1), jnp.float32),
            jax.ShapeDtypeStruct((n, oc, 1), jnp.float32),
        ),
        grid=(n,),
        in_specs=[
            pl.BlockSpec((k * k, oc, c), lambda b: (0, 0, 0)),     # weights, resident
            pl.BlockSpec((None, c, hw_pad), lambda b: (b, 0, 0)),  # one batch of x
            pl.BlockSpec((1, ohw_acc), lambda b: (0, 0)),          # valid mask, resident
        ],
        out_specs=(
            pl.BlockSpec((None, oc, ohw_acc), lambda b: (b, 0, 0)),  # conv output
            pl.BlockSpec((None, oc, 1), lambda b: (b, 0, 0)),        # per-batch sum
            pl.BlockSpec((None, oc, 1), lambda b: (b, 0, 0)),        # per-batch sumsq
        ),
        compiler_params=pltpu.CompilerParams(dimension_semantics=("parallel",)),
    )(w_taps, x_flat, mask)

    # ---- Fold BN into per-channel scale/shift (tiny, plain JAX) -----------------
    count = jnp.float32(n * oh * ow)                     # masked columns contribute 0
    mean = jnp.sum(sums, axis=0) / count                 # (OC, 1)
    var = jnp.sum(ssqs, axis=0) / count - mean * mean    # biased variance
    inv = jax.lax.rsqrt(var + BN_EPS)
    scale = gamma.astype(jnp.float32).reshape(oc, 1) * inv
    shift = beta.astype(jnp.float32).reshape(oc, 1) - mean * scale

    # One fused XLA pass: FMA + slice off padding + reshape to NCHW.
    out = y_flat[:, :, :oh * w_in] * scale[None] + shift[None]
    return out.reshape(n, oc, oh, w_in)[:, :, :, :ow]


def reference(x, weight, gamma, beta, stride):
    y = jax.lax.conv_general_dilated(
        x.astype(jnp.float32), weight.astype(jnp.float32),
        window_strides=(stride, stride), padding="VALID",
        dimension_numbers=("NCHW", "OIHW", "NCHW"))
    mean = y.mean(axis=(0, 2, 3), keepdims=True)
    var = ((y - mean) ** 2).mean(axis=(0, 2, 3), keepdims=True)
    y_hat = (y - mean) / jnp.sqrt(var + BN_EPS)
    return y_hat * gamma.reshape(1, -1, 1, 1) + beta.reshape(1, -1, 1, 1)


if __name__ == "__main__":
    # Conv(in_channels=4, out_channels=8, kernel_size=3, stride=1, bn=8)
    N, C, H, W = 2, 4, 16, 16
    OC, K, STRIDE = 8, 3, 1

    key = jax.random.PRNGKey(0)
    kx, kw, kg, kb = jax.random.split(key, 4)

    x = jax.random.normal(kx, (N, C, H, W), dtype=jnp.float32)
    weight = 0.1 * jax.random.normal(kw, (OC, C, K, K), dtype=jnp.float32)  # Conv2d weight, bias=False
    gamma = 1.0 + 0.1 * jax.random.normal(kg, (OC,), dtype=jnp.float32)     # BatchNorm2d.weight
    beta = 0.1 * jax.random.normal(kb, (OC,), dtype=jnp.float32)            # BatchNorm2d.bias

    out = conv_bn_forward(x, weight, gamma, beta, STRIDE)
    out = jax.block_until_ready(out)

    ref = reference(x, weight, gamma, beta, STRIDE)
    assert out.shape == ref.shape == (N, OC, (H - K) // STRIDE + 1, (W - K) // STRIDE + 1)
    # Tolerance accounts for bf16 MXU inputs (stats/accumulation are f32).
    assert jnp.allclose(out, ref, atol=3e-2, rtol=3e-2), float(jnp.max(jnp.abs(out - ref)))

    print("KERNEL_OK")
</pallas_src>

<mosaic_0001>
module attributes {stable_mosaic.version = 11 : i64} {
  func.func @conv_stats_kernel(%arg0: i32, %arg1: memref<9x8x4xbf16, #tpu.memory_space<vmem>>, %arg2: memref<1x4x384xbf16, #tpu.memory_space<vmem>>, %arg3: memref<1x256xf32, #tpu.memory_space<vmem>>, %arg4: memref<1x8x256xf32, #tpu.memory_space<vmem>>, %arg5: memref<1x8x1xf32, #tpu.memory_space<vmem>>, %arg6: memref<1x8x1xf32, #tpu.memory_space<vmem>>) attributes {dimension_semantics = [#tpu.dimension_semantics<parallel>], iteration_bounds = array<i64: 2>, scalar_prefetch = 0 : i64, scratch_operands = 0 : i64, tpu.core_type = #tpu.core_type<tc>, window_params = [{pipeline_mode = #tpu.pipeline_mode<synchronous>, transform_indices = @transform_0, window_bounds = array<i64: 9, 8, 4>}, {transform_indices = @transform_1, window_bounds = array<i64: 1, 4, 384>}, {pipeline_mode = #tpu.pipeline_mode<synchronous>, transform_indices = @transform_2, window_bounds = array<i64: 1, 256>}, {transform_indices = @transform_3, window_bounds = array<i64: 1, 8, 256>}, {transform_indices = @transform_4, window_bounds = array<i64: 1, 8, 1>}, {transform_indices = @transform_5, window_bounds = array<i64: 1, 8, 1>}]} {
    %cst = arith.constant 0.000000e+00 : f32
    %0 = vector.broadcast %cst : f32 to vector<8x256xf32>
    %c0 = arith.constant 0 : index
    %c0_0 = arith.constant 0 : index
    %c0_1 = arith.constant 0 : index
    %1 = vector.load %arg2[%c0, %c0_0, %c0_1] : memref<1x4x384xbf16, #tpu.memory_space<vmem>>, vector<1x4x256xbf16>
    %2 = vector.shape_cast %1 : vector<1x4x256xbf16> to vector<4x256xbf16>
    %c0_2 = arith.constant 0 : index
    %c0_3 = arith.constant 0 : index
    %c0_4 = arith.constant 0 : index
    %3 = vector.load %arg1[%c0_2, %c0_3, %c0_4] : memref<9x8x4xbf16, #tpu.memory_space<vmem>>, vector<1x8x4xbf16>
    %4 = vector.shape_cast %3 : vector<1x8x4xbf16> to vector<8x4xbf16>
    %cst_5 = arith.constant dense<0.000000e+00> : vector<8x256xf32>
    %5 = tpu.matmul %4, %2, %cst_5 {dimension_numbers = #tpu.dot_dimension_numbers<[1], [0], [0], [1], [0, 0, 1, 1], [], []>} : vector<8x4xbf16>, vector<4x256xbf16>, vector<8x256xf32> -> vector<8x256xf32>
    %6 = arith.addf %0, %5 : vector<8x256xf32>
    %c0_6 = arith.constant 0 : index
    %c0_7 = arith.constant 0 : index
    %c1 = arith.constant 1 : index
    %7 = vector.load %arg2[%c0_6, %c0_7, %c1] : memref<1x4x384xbf16, #tpu.memory_space<vmem>>, vector<1x4x256xbf16>
    %8 = vector.shape_cast %7 : vector<1x4x256xbf16> to vector<4x256xbf16>
    %c1_8 = arith.constant 1 : index
    %c0_9 = arith.constant 0 : index
    %c0_10 = arith.constant 0 : index
    %9 = vector.load %arg1[%c1_8, %c0_9, %c0_10] : memref<9x8x4xbf16, #tpu.memory_space<vmem>>, vector<1x8x4xbf16>
    %10 = vector.shape_cast %9 : vector<1x8x4xbf16> to vector<8x4xbf16>
    %cst_11 = arith.constant dense<0.000000e+00> : vector<8x256xf32>
    %11 = tpu.matmul %10, %8, %cst_11 {dimension_numbers = #tpu.dot_dimension_numbers<[1], [0], [0], [1], [0, 0, 1, 1], [], []>} : vector<8x4xbf16>, vector<4x256xbf16>, vector<8x256xf32> -> vector<8x256xf32>
    %12 = arith.addf %6, %11 : vector<8x256xf32>
    %c0_12 = arith.constant 0 : index
    %c0_13 = arith.constant 0 : index
    %c2 = arith.constant 2 : index
    %13 = vector.load %arg2[%c0_12, %c0_13, %c2] : memref<1x4x384xbf16, #tpu.memory_space<vmem>>, vector<1x4x256xbf16>
    %14 = vector.shape_cast %13 : vector<1x4x256xbf16> to vector<4x256xbf16>
    %c2_14 = arith.constant 2 : index
    %c0_15 = arith.constant 0 : index
    %c0_16 = arith.constant 0 : index
    %15 = vector.load %arg1[%c2_14, %c0_15, %c0_16] : memref<9x8x4xbf16, #tpu.memory_space<vmem>>, vector<1x8x4xbf16>
    %16 = vector.shape_cast %15 : vector<1x8x4xbf16> to vector<8x4xbf16>
    %cst_17 = arith.constant dense<0.000000e+00> : vector<8x256xf32>
    %17 = tpu.matmul %16, %14, %cst_17 {dimension_numbers = #tpu.dot_dimension_numbers<[1], [0], [0], [1], [0, 0, 1, 1], [], []>} : vector<8x4xbf16>, vector<4x256xbf16>, vector<8x256xf32> -> vector<8x256xf32>
    %18 = arith.addf %12, %17 : vector<8x256xf32>
    %c0_18 = arith.constant 0 : index
    %c0_19 = arith.constant 0 : index
    %c16 = arith.constant 16 : index
    %19 = vector.load %arg2[%c0_18, %c0_19, %c16] : memref<1x4x384xbf16, #tpu.memory_space<vmem>>, vector<1x4x256xbf16>
    %20 = vector.shape_cast %19 : vector<1x4x256xbf16> to vector<4x256xbf16>
    %c3 = arith.constant 3 : index
    %c0_20 = arith.constant 0 : index
    %c0_21 = arith.constant 0 : index
    %21 = vector.load %arg1[%c3, %c0_20, %c0_21] : memref<9x8x4xbf16, #tpu.memory_space<vmem>>, vector<1x8x4xbf16>
    %22 = vector.shape_cast %21 : vector<1x8x4xbf16> to vector<8x4xbf16>
    %cst_22 = arith.constant dense<0.000000e+00> : vector<8x256xf32>
    %23 = tpu.matmul %22, %20, %cst_22 {dimension_numbers = #tpu.dot_dimension_numbers<[1], [0], [0], [1], [0, 0, 1, 1], [], []>} : vector<8x4xbf16>, vector<4x256xbf16>, vector<8x256xf32> -> vector<8x256xf32>
    %24 = arith.addf %18, %23 : vector<8x256xf32>
    %c0_23 = arith.constant 0 : index
    %c0_24 = arith.constant 0 : index
    %c17 = arith.constant 17 : index
    %25 = vector.load %arg2[%c0_23, %c0_24, %c17] : memref<1x4x384xbf16, #tpu.memory_space<vmem>>, vector<1x4x256xbf16>
    %26 = vector.shape_cast %25 : vector<1x4x256xbf16> to vector<4x256xbf16>
    %c4 = arith.constant 4 : index
    %c0_25 = arith.constant 0 : index
    %c0_26 = arith.constant 0 : index
    %27 = vector.load %arg1[%c4, %c0_25, %c0_26] : memref<9x8x4xbf16, #tpu.memory_space<vmem>>, vector<1x8x4xbf16>
    %28 = vector.shape_cast %27 : vector<1x8x4xbf16> to vector<8x4xbf16>
    %cst_27 = arith.constant dense<0.000000e+00> : vector<8x256xf32>
    %29 = tpu.matmul %28, %26, %cst_27 {dimension_numbers = #tpu.dot_dimension_numbers<[1], [0], [0], [1], [0, 0, 1, 1], [], []>} : vector<8x4xbf16>, vector<4x256xbf16>, vector<8x256xf32> -> vector<8x256xf32>
    %30 = arith.addf %24, %29 : vector<8x256xf32>
    %c0_28 = arith.constant 0 : index
    %c0_29 = arith.constant 0 : index
    %c18 = arith.constant 18 : index
    %31 = vector.load %arg2[%c0_28, %c0_29, %c18] : memref<1x4x384xbf16, #tpu.memory_space<vmem>>, vector<1x4x256xbf16>
    %32 = vector.shape_cast %31 : vector<1x4x256xbf16> to vector<4x256xbf16>
    %c5 = arith.constant 5 : index
    %c0_30 = arith.constant 0 : index
    %c0_31 = arith.constant 0 : index
    %33 = vector.load %arg1[%c5, %c0_30, %c0_31] : memref<9x8x4xbf16, #tpu.memory_space<vmem>>, vector<1x8x4xbf16>
    %34 = vector.shape_cast %33 : vector<1x8x4xbf16> to vector<8x4xbf16>
    %cst_32 = arith.constant dense<0.000000e+00> : vector<8x256xf32>
    %35 = tpu.matmul %34, %32, %cst_32 {dimension_numbers = #tpu.dot_dimension_numbers<[1], [0], [0], [1], [0, 0, 1, 1], [], []>} : vector<8x4xbf16>, vector<4x256xbf16>, vector<8x256xf32> -> vector<8x256xf32>
    %36 = arith.addf %30, %35 : vector<8x256xf32>
    %c0_33 = arith.constant 0 : index
    %c0_34 = arith.constant 0 : index
    %c32 = arith.constant 32 : index
    %37 = vector.load %arg2[%c0_33, %c0_34, %c32] : memref<1x4x384xbf16, #tpu.memory_space<vmem>>, vector<1x4x256xbf16>
    %38 = vector.shape_cast %37 : vector<1x4x256xbf16> to vector<4x256xbf16>
    %c6 = arith.constant 6 : index
    %c0_35 = arith.constant 0 : index
    %c0_36 = arith.constant 0 : index
    %39 = vector.load %arg1[%c6, %c0_35, %c0_36] : memref<9x8x4xbf16, #tpu.memory_space<vmem>>, vector<1x8x4xbf16>
    %40 = vector.shape_cast %39 : vector<1x8x4xbf16> to vector<8x4xbf16>
    %cst_37 = arith.constant dense<0.000000e+00> : vector<8x256xf32>
    %41 = tpu.matmul %40, %38, %cst_37 {dimension_numbers = #tpu.dot_dimension_numbers<[1], [0], [0], [1], [0, 0, 1, 1], [], []>} : vector<8x4xbf16>, vector<4x256xbf16>, vector<8x256xf32> -> vector<8x256xf32>
    %42 = arith.addf %36, %41 : vector<8x256xf32>
    %c0_38 = arith.constant 0 : index
    %c0_39 = arith.constant 0 : index
    %c33 = arith.constant 33 : index
    %43 = vector.load %arg2[%c0_38, %c0_39, %c33] : memref<1x4x384xbf16, #tpu.memory_space<vmem>>, vector<1x4x256xbf16>
    %44 = vector.shape_cast %43 : vector<1x4x256xbf16> to vector<4x256xbf16>
    %c7 = arith.constant 7 : index
    %c0_40 = arith.constant 0 : index
    %c0_41 = arith.constant 0 : index
    %45 = vector.load %arg1[%c7, %c0_40, %c0_41] : memref<9x8x4xbf16, #tpu.memory_space<vmem>>, vector<1x8x4xbf16>
    %46 = vector.shape_cast %45 : vector<1x8x4xbf16> to vector<8x4xbf16>
    %cst_42 = arith.constant dense<0.000000e+00> : vector<8x256xf32>
    %47 = tpu.matmul %46, %44, %cst_42 {dimension_numbers = #tpu.dot_dimension_numbers<[1], [0], [0], [1], [0, 0, 1, 1], [], []>} : vector<8x4xbf16>, vector<4x256xbf16>, vector<8x256xf32> -> vector<8x256xf32>
    %48 = arith.addf %42, %47 : vector<8x256xf32>
    %c0_43 = arith.constant 0 : index
    %c0_44 = arith.constant 0 : index
    %c34 = arith.constant 34 : index
    %49 = vector.load %arg2[%c0_43, %c0_44, %c34] : memref<1x4x384xbf16, #tpu.memory_space<vmem>>, vector<1x4x256xbf16>
    %50 = vector.shape_cast %49 : vector<1x4x256xbf16> to vector<4x256xbf16>
    %c8 = arith.constant 8 : index
    %c0_45 = arith.constant 0 : index
    %c0_46 = arith.constant 0 : index
    %51 = vector.load %arg1[%c8, %c0_45, %c0_46] : memref<9x8x4xbf16, #tpu.memory_space<vmem>>, vector<1x8x4xbf16>
    %52 = vector.shape_cast %51 : vector<1x8x4xbf16> to vector<8x4xbf16>
    %cst_47 = arith.constant dense<0.000000e+00> : vector<8x256xf32>
    %53 = tpu.matmul %52, %50, %cst_47 {dimension_numbers = #tpu.dot_dimension_numbers<[1], [0], [0], [1], [0, 0, 1, 1], [], []>} : vector<8x4xbf16>, vector<4x256xbf16>, vector<8x256xf32> -> vector<8x256xf32>
    %54 = arith.addf %48, %53 : vector<8x256xf32>
    %c0_48 = arith.constant 0 : index
    %c0_49 = arith.constant 0 : index
    %c0_50 = arith.constant 0 : index
    %55 = vector.load %arg4[%c0_48, %c0_49, %c0_50] : memref<1x8x256xf32, #tpu.memory_space<vmem>>, vector<1x8x256xf32>
    %56 = vector.shape_cast %55 : vector<1x8x256xf32> to vector<8x256xf32>
    %57 = vector.shape_cast %54 : vector<8x256xf32> to vector<1x8x256xf32>
    tpu.vector_store %arg4[%c0_48, %c0_49, %c0_50], %57 {strides = array<i32>} : memref<1x8x256xf32, #tpu.memory_space<vmem>>, vector<1x8x256xf32>,
    %c0_51 = arith.constant 0 : index
    %c0_52 = arith.constant 0 : index
    %58 = vector.load %arg3[%c0_51, %c0_52] : memref<1x256xf32, #tpu.memory_space<vmem>>, vector<1x256xf32>
    %59 = vector.broadcast %58 : vector<1x256xf32> to vector<8x256xf32>
    %60 = arith.mulf %54, %59 : vector<8x256xf32>
    %cst_53 = arith.constant dense<0.000000e+00> : vector<8xf32>
    %61 = vector.multi_reduction <add>, %60, %cst_53 [1] : vector<8x256xf32> to vector<8xf32>
    %62 = vector.shape_cast %61 : vector<8xf32> to vector<8x1xf32>
    %c0_54 = arith.constant 0 : index
    %c0_55 = arith.constant 0 : index
    %c0_56 = arith.constant 0 : index
    %63 = vector.load %arg5[%c0_54, %c0_55, %c0_56] : memref<1x8x1xf32, #tpu.memory_space<vmem>>, vector<1x8x1xf32>
    %64 = vector.shape_cast %63 : vector<1x8x1xf32> to vector<8x1xf32>
    %65 = vector.shape_cast %62 : vector<8x1xf32> to vector<1x8x1xf32>
    tpu.vector_store %arg5[%c0_54, %c0_55, %c0_56], %65 {strides = array<i32>} : memref<1x8x1xf32, #tpu.memory_space<vmem>>, vector<1x8x1xf32>,
    %66 = arith.mulf %60, %54 : vector<8x256xf32>
    %cst_57 = arith.constant dense<0.000000e+00> : vector<8xf32>
    %67 = vector.multi_reduction <add>, %66, %cst_57 [1] : vector<8x256xf32> to vector<8xf32>
    %68 = vector.shape_cast %67 : vector<8xf32> to vector<8x1xf32>
    %c0_58 = arith.constant 0 : index
    %c0_59 = arith.constant 0 : index
    %c0_60 = arith.constant 0 : index
    %69 = vector.load %arg6[%c0_58, %c0_59, %c0_60] : memref<1x8x1xf32, #tpu.memory_space<vmem>>, vector<1x8x1xf32>
    %70 = vector.shape_cast %69 : vector<1x8x1xf32> to vector<8x1xf32>
    %71 = vector.shape_cast %68 : vector<8x1xf32> to vector<1x8x1xf32>
    tpu.vector_store %arg6[%c0_58, %c0_59, %c0_60], %71 {strides = array<i32>} : memref<1x8x1xf32, #tpu.memory_space<vmem>>, vector<1x8x1xf32>,
    return
  }
  func.func @transform_0(%arg0: i32) -> (i32, i32, i32) {
    %c0_i32 = arith.constant 0 : i32
    %c0_i32_0 = arith.constant 0 : i32
    %c0_i32_1 = arith.constant 0 : i32
    %c0_i32_2 = arith.constant 0 : i32
    return %c0_i32, %c0_i32_0, %c0_i32_1 : i32, i32, i32
  }
  func.func @transform_1(%arg0: i32) -> (i32, i32, i32) {
    %c0_i32 = arith.constant 0 : i32
    %c0_i32_0 = arith.constant 0 : i32
    %c0_i32_1 = arith.constant 0 : i32
    return %arg0, %c0_i32, %c0_i32_0 : i32, i32, i32
  }
  func.func @transform_2(%arg0: i32) -> (i32, i32) {
    %c0_i32 = arith.constant 0 : i32
    %c0_i32_0 = arith.constant 0 : i32
    %c0_i32_1 = arith.constant 0 : i32
    return %c0_i32, %c0_i32_0 : i32, i32
  }
  func.func @transform_3(%arg0: i32) -> (i32, i32, i32) {
    %c0_i32 = arith.constant 0 : i32
    %c0_i32_0 = arith.constant 0 : i32
    %c0_i32_1 = arith.constant 0 : i32
    return %arg0, %c0_i32, %c0_i32_0 : i32, i32, i32
  }
  func.func @transform_4(%arg0: i32) -> (i32, i32, i32) {
    %c0_i32 = arith.constant 0 : i32
    %c0_i32_0 = arith.constant 0 : i32
    %c0_i32_1 = arith.constant 0 : i32
    return %arg0, %c0_i32, %c0_i32_0 : i32, i32, i32
  }
  func.func @transform_5(%arg0: i32) -> (i32, i32, i32) {
    %c0_i32 = arith.constant 0 : i32
    %c0_i32_0 = arith.constant 0 : i32
    %c0_i32_1 = arith.constant 0 : i32
    return %arg0, %c0_i32, %c0_i32_0 : i32, i32, i32
  }
}

</mosaic_0001>

<bundles_post_ra>
// kernel: conv_bn_forward.1
= control target key start
LH: loop header
LB: loop body
LE: loop exit
PB: predicated region body
PF: predicated region fallthrough
CT: control target
= control target key end

     0   :  { %s1245_s18 = smov 0   ;;  %s1373_s0 = inlined_call_operand.vmem [shape: bf16[9,8,4], index: 0, kind: input, shape index: {}]   ;;  %s1374_s1 = inlined_call_operand.vmem [shape: bf16[2,4,384], index: 1, kind: input, shape index: {}]   ;;  %s1375_s2 = inlined_call_operand.vmem [shape: f32[1,256], index: 2, kind: input, shape index: {}]   ;;  %s1376_s3 = inlined_call_operand.vmem [shape: f32[2,8,256], index: 3, kind: output, shape index: {0}]   ;;  %s1377_s4 = inlined_call_operand.vmem [shape: f32[2,8,1], index: 4, kind: output, shape index: {1}]   ;;  %s1378_s5 = inlined_call_operand.vmem [shape: f32[2,8,1], index: 5, kind: output, shape index: {2}]  }
   0x1 LB: > { %s1100_s19 = sadd.s32 4294967295, %s1203_s18   ;;  %p1104_p0 = scmp.ge.s32.totalorder %s1203_s18, 1  ;;  %s1203_s18 = sphi %s1245_s18, %s16_s18  }
   0x2   : > { %p192_p1 = scmp.lt.s32.totalorder %s1203_s18, 3 }
   0x4   : > { %p193_p2 = pnand %p1104_p0, %p192_p1 }
   0x5   : > { %p228_p3 = scmp.lt.s32.totalorder (!%p193_p2), %s1100_s19, 1  ;;  %v257_v0 = vlaneseq (!%p193_p2)  ;;  %v1205_v1 = vmov (!%p193_p2), 1983009808   ;;  %v1206_v6 = vmov (!%p193_p2), 0   ;;  %s1207_s24 = smov (!%p193_p2), 111   ;;  %vm577_vm0 = vcmask (!%p193_p2), 908288  }
   0x6   : > { %196 = sbr.rel (%p193_p2) target bundleno = 556 (0x22c), region = 32  ;;  %v255_v2 = vunpack.c.l.s4 (!%p193_p2), %v1205_v1  ;;  %621 = vmatprep.mubr.bf16.mxu0 (!%p193_p2), %v1206_v6  ;;  %321 = vmatprep.mubr.bf16.mxu1 (!%p193_p2), %v1206_v6  ;;  %s1208_s25 = smov (!%p193_p2), 127   ;;  %vm282_vm1 = vcmask (!%p193_p2), 1041408   ;;  %vm278_vm2 = vcmask (!%p193_p2), 31744   ;;  %v1122_v54 = vld [vmem:[%s1373_s0 + $0x10] sm:$0xf] (!%p193_p2) }
   0x7   : > { %v1255_v3 = vshrl.u32 (!%p193_p2), %v257_v0, 7  ;;  %s1209_s26 = smov (!%p193_p2), 110   ;;  %s1210_s27 = smov (!%p193_p2), 96   ;;  %vm275_vm3 = vcmask (!%p193_p2), 1039360   ;;  %vm658_vm4 = vcmask (!%p193_p2), 900096   ;;  %vm739_vm5 = vcmask (!%p193_p2), 785408  }
   0x8   : > { %v256_v4 = vunpack.c.0.s8 (!%p193_p2), %v255_v2  ;;  %s1211_s28 = smov (!%p193_p2), 126   ;;  %s1212_s29 = smov (!%p193_p2), 95   ;;  %v1110_v1 = vld [vmem:[%s1373_s0 + $0x4] sm:$0xf] (!%p193_p2)  ;;  %vm415_vm6 = vcmask (!%p193_p2), 1031168   ;;  %vm820_vm7 = vcmask (!%p193_p2), 777216  }
   0x9   : > { %s1213_s30 = smov (!%p193_p2), 112   ;;  %s1214_s6 = smov (!%p193_p2), 94   ;;  %vm496_vm8 = vcmask (!%p193_p2), 916480   ;;  %vm901_vm9 = vcmask (!%p193_p2), 769024   ;;  %vm975_vm10 = vcmask (!%p193_p2), 7168  }
   0xa   : > { %v1259_v5 = vsub.s32 (!%p193_p2), %v256_v4, %v1255_v3 }
   0xd   : > { %s1380_s19 = smov (!%p228_p3, %s1100_s19), 1 }
   0xe   : > { %s1170_s20 = smul.u32 6, %s1380_s19  ;;  %s1108_s8 = sshll.u32 %s1380_s19, 3 }
   0xf   : > { %s241_s11 = scalar_lea.vmem %s1377_s4, %s1108_s8  ;;  %s245_s14 = scalar_lea.vmem %s1378_s5, %s1108_s8 }
  0x10   : > { %s1266_s23 = scalar_lea.vmem %s1374_s1, %s1170_s20 }
  0x11   : > { %v551_v7 = vld [vmem:[%s1266_s23] sm:$0x3f] }
  0x12   : > { %v562_v8 = vrot.slane %v551_v7, %v1259_v5  ;;  %v555_v9 = vcombine.high %v551_v7, %v551_v7  ;;  %v249_v10 = vld [vmem:[%s1266_s23] sm:$0x3f] }
  0x13   : > { %v632_v13 = vld [vmem:[%s1266_s23] sm:$0x3f]  ;;  %v260_v14 = vrot.slane %v249_v10, %v1259_v5  ;;  %v253_v15 = vcombine.high %v249_v10, %v249_v10 }
  0x14   : > { %571 = vrot.lane.b32.xlu0 %v562_v8, %s1207_s24  ;;  %v570_v11 = vcombine.high %v562_v8, %v562_v8  ;;  %v569_v12 = vrot.slane %v555_v9, %v1259_v5  ;;  %v643_v16 = vrot.slane %v632_v13, %v1259_v5  ;;  %v636_v19 = vcombine.high %v632_v13, %v632_v13  ;;  %v713_v21 = vld [vmem:[%s1266_s23] sm:$0x3f]  ;;  %v1125_v9 = vld [vmem:[%s1373_s0 + $0x14] sm:$0xf] }
  0x15   : > { %v267_v17 = vrot.slane %v253_v15, %v1259_v5  ;;  %v268_v18 = vcombine.high %v260_v14, %v260_v14  ;;  %v724_v23 = vrot.slane %v713_v21, %v1259_v5  ;;  %v717_v24 = vcombine.high %v713_v21, %v713_v21  ;;  %v389_v25 = vld [vmem:[%s1266_s23] sm:$0x3f] }
  0x16   : > { %575 = vrot.lane.b32.xlu1 %v569_v12, %s1207_s24  ;;  %v651_v20 = vcombine.high %v643_v16, %v643_v16  ;;  %v650_v22 = vrot.slane %v636_v19, %v1259_v5  ;;  %v400_v28 = vrot.slane %v389_v25, %v1259_v5  ;;  %v393_v29 = vcombine.high %v389_v25, %v389_v25  ;;  %v794_v31 = vld [vmem:[%s1266_s23] sm:$0x3f] }
  0x17   : > { %v732_v26 = vcombine.high %v724_v23, %v724_v23  ;;  %v731_v27 = vrot.slane %v717_v24, %v1259_v5  ;;  %v805_v33 = vrot.slane %v794_v31, %v1259_v5  ;;  %v798_v34 = vcombine.high %v794_v31, %v794_v31  ;;  %v470_v35 = vld [vmem:[%s1266_s23] sm:$0x3f] }
  0x18   : > { %573 = vrot.lane.b32.xlu0 %v570_v11, %s1207_s24  ;;  %v408_v30 = vcombine.high %v400_v28, %v400_v28  ;;  %v407_v32 = vrot.slane %v393_v29, %v1259_v5  ;;  %v481_v38 = vrot.slane %v470_v35, %v1259_v5  ;;  %v474_v39 = vcombine.high %v470_v35, %v470_v35  ;;  %v875_v41 = vld [vmem:[%s1266_s23] sm:$0x3f] }
  0x19   : > { %v813_v36 = vcombine.high %v805_v33, %v805_v33  ;;  %v812_v37 = vrot.slane %v798_v34, %v1259_v5  ;;  %v886_v43 = vrot.slane %v875_v41, %v1259_v5  ;;  %v879_v44 = vcombine.high %v875_v41, %v875_v41  ;;  %v1113_v56 = vld.sshfl [vmem:[%s1266_s23] sm:$0x33 pattern:$0x76325410] }
  0x1a   : > { %269 = vrot.lane.b32.xlu1 %v260_v14, %s1208_s25  ;;  %v489_v40 = vcombine.high %v481_v38, %v481_v38  ;;  %v488_v42 = vrot.slane %v474_v39, %v1259_v5  ;;  %v338_v59 = vcombine.high %v1113_v56, %v1113_v56  ;;  %v343_v4 = vsel %vm282_vm1, %v1113_v56, 0 }
  0x1b   : > { %v894_v45 = vcombine.high %v886_v43, %v886_v43  ;;  %v893_v46 = vrot.slane %v879_v44, %v1259_v5  ;;  %v1134_v44 = vld [vmem:[%s1373_s0 + $0x20] sm:$0xf] }
  0x1c   : > { %652 = vrot.lane.b32.xlu0 %v643_v16, %s1209_s26 }
  0x1e   : > { %273 = vrot.lane.b32.xlu1 %v267_v17, %s1208_s25 }
  0x20   : > { %271 = vrot.lane.b32.xlu0 %v268_v18, %s1208_s25  ;;  %v248_v18 = vld [vmem:[%s1373_s0] sm:$0xf] }
  0x22   : > { %654 = vrot.lane.b32.xlu1 %v651_v20, %s1209_s26 }
  0x24   : > { %656 = vrot.lane.b32.xlu0 %v650_v22, %s1209_s26 }
  0x26   : > { %733 = vrot.lane.b32.xlu1 %v724_v23, %s1210_s27  ;;  %v1128_v23 = vld [vmem:[%s1373_s0 + $0x18] sm:$0xf] }
  0x28   : > { %735 = vrot.lane.b32.xlu0 %v732_v26, %s1210_s27 }
  0x2a   : > { %737 = vrot.lane.b32.xlu1 %v731_v27, %s1210_s27 }
  0x2c   : > { %409 = vrot.lane.b32.xlu0 %v400_v28, %s1211_s28 }
  0x2e   : > { %411 = vrot.lane.b32.xlu1 %v408_v30, %s1211_s28 }
  0x30   : > { %413 = vrot.lane.b32.xlu0 %v407_v32, %s1211_s28  ;;  %v1116_v32 = vld [vmem:[%s1373_s0 + $0x8] sm:$0xf] }
  0x32   : > { %814 = vrot.lane.b32.xlu1 %v805_v33, %s1212_s29 }
  0x34   : > { %816 = vrot.lane.b32.xlu0 %v813_v36, %s1212_s29 }
  0x36   : > { %818 = vrot.lane.b32.xlu1 %v812_v37, %s1212_s29  ;;  %v1131_v37 = vld [vmem:[%s1373_s0 + $0x1c] sm:$0xf]  ;;  %s1139_s29 = sshll.u32 %s1380_s19, 4 }
  0x37   : > { %s237_s7 = scalar_lea.vmem %s1376_s3, %s1139_s29 }
  0x38   : > { %490 = vrot.lane.b32.xlu0 %v481_v38, %s1213_s30 }
  0x3a   : > { %492 = vrot.lane.b32.xlu1 %v489_v40, %s1213_s30 }
  0x3c   : > { %494 = vrot.lane.b32.xlu0 %v488_v42, %s1213_s30 }
  0x3e   : > { %895 = vrot.lane.b32.xlu1 %v886_v43, %s1214_s6  ;;  %v1119_v43 = vld [vmem:[%s1373_s0 + $0xc] sm:$0xf] }
  0x40   : > { %897 = vrot.lane.b32.xlu0 %v894_v45, %s1214_s6  ;;  %v962_v45 = vsub.s32 0, %v1255_v3 }
  0x42   : > { %899 = vrot.lane.b32.xlu1 %v893_v46, %s1214_s6 }
  0x86   : > { %v572_v47 = vpop.permute.xlu0 %571 }
  0x88   : > { %v576_v48 = vpop.permute.xlu1 %575 }
  0x8a   : > { %v574_v49 = vpop.permute.xlu0 %573 }
  0x8b   : > { %v579_v50 = vsel %vm577_vm0, %v574_v49, %v576_v48  ;;  %v578_v51 = vsel %vm577_vm0, %v572_v47, %v574_v49  ;;  %v966_v47 = vsub.s32 1, %v1255_v3 }
  0x8c   : > { %1123 = vmatprep.subr.msk.bf16.mxu0 %vm282_vm1, %v579_v50  ;;  %v270_v52 = vpop.permute.xlu1 %269  ;;  %v584_v53 = vsel %vm282_vm1, %v578_v51, 0 }
  0x8d   : > { %590 = vmatpush1.bf16.msra.mxu0 %v584_v53 }
  0x8e   : > { %v653_v55 = vpop.permute.xlu0 %652 }
  0x90   : > { %1124 = vmatmul.mubr.msk.bf16.vlgmr.msra.gmra.mrb[0].mxu0 %vm278_vm2, %v1122_v54  ;;  %v274_v57 = vpop.permute.xlu1 %273 }
  0x91   : > { %702 = vmatprep.mubr.bf16.mxu0 %v1206_v6 }
  0x92   : > { %v272_v58 = vpop.permute.xlu0 %271 }
  0x93   : > { %v277_v60 = vsel %vm275_vm3, %v272_v58, %v274_v57  ;;  %v276_v61 = vsel %vm275_vm3, %v270_v52, %v272_v58 }
  0x94   : > { %1111 = vmatprep.subr.msk.bf16.mxu1 %vm282_vm1, %v277_v60  ;;  %v655_v62 = vpop.permute.xlu1 %654  ;;  %v284_v63 = vsel %vm282_vm1, %v276_v61, 0 }
  0x95   : > { %v659_v0 = vsel %vm658_vm4, %v653_v55, %v655_v62  ;;  %290 = vmatpush1.bf16.msra.mxu1 %v284_v63 }
  0x96   : > { %v657_v2 = vpop.permute.xlu0 %656  ;;  %1114 = vmatprep.subr.msk.bf16.mxu1 %vm282_vm1, %v338_v59  ;;  %v665_v7 = vsel %vm282_vm1, %v659_v0, 0 }
  0x97   : > { %v660_v5 = vsel %vm658_vm4, %v655_v62, %v657_v2 }
  0x98   : > { %1112 = vmatmul.mubr.msk.bf16.vlgmr.msra.gmra.mrb[0].mxu1 %vm278_vm2, %v1110_v1  ;;  %1126 = vmatprep.subr.msk.bf16.mxu0 %vm282_vm1, %v660_v5  ;;  %v734_v8 = vpop.permute.xlu1 %733 }
  0x99   : > { %671 = vmatpush1.bf16.msra.mxu0 %v665_v7  ;;  %349 = vmatpush1.bf16.msra.mxu1 %v343_v4 }
  0x9a   : > { %v736_v10 = vpop.permute.xlu0 %735  ;;  %380 = vmatprep.mubr.bf16.mxu1 %v1206_v6 }
  0x9b   : > { %v740_v11 = vsel %vm739_vm5, %v734_v8, %v736_v10 }
  0x9c   : > { %1127 = vmatmul.mubr.msk.bf16.vlgmr.msra.gmra.mrb[0].mxu0 %vm278_vm2, %v1125_v9  ;;  %v746_v12 = vsel %vm282_vm1, %v740_v11, 0  ;;  %v738_v13 = vpop.permute.xlu1 %737 }
  0x9d   : > { %v741_v14 = vsel %vm739_vm5, %v736_v10, %v738_v13  ;;  %783 = vmatprep.mubr.bf16.mxu0 %v1206_v6 }
  0x9e   : > { %1129 = vmatprep.subr.msk.bf16.mxu0 %vm282_vm1, %v741_v14  ;;  %v410_v15 = vpop.permute.xlu0 %409 }
  0x9f   : > { %752 = vmatpush1.bf16.msra.mxu0 %v746_v12 }
  0xa0   : > { %v412_v16 = vpop.permute.xlu1 %411 }
  0xa1   : > { %v416_v17 = vsel %vm415_vm6, %v410_v15, %v412_v16 }
  0xa2   : > { %v422_v19 = vsel %vm282_vm1, %v416_v17, 0  ;;  %v414_v20 = vpop.permute.xlu0 %413 }
  0xa3   : > { %v417_v21 = vsel %vm415_vm6, %v412_v16, %v414_v20 }
  0xa4   : > { %1115 = vmatmul.mubr.msk.bf16.vlgmr.msra.gmra.mrb[0].mxu1 %vm278_vm2, %v248_v18  ;;  %v815_v22 = vpop.permute.xlu1 %814  ;;  %1117 = vmatprep.subr.msk.bf16.mxu1 %vm282_vm1, %v417_v21 }
  0xa5   : > { %428 = vmatpush1.bf16.msra.mxu1 %v422_v19  ;;  %459 = vmatprep.mubr.bf16.mxu1 %v1206_v6 }
  0xa6   : > { %v817_v24 = vpop.permute.xlu0 %816 }
  0xa7   : > { %v821_v25 = vsel %vm820_vm7, %v815_v22, %v817_v24 }
  0xa8   : > { %1130 = vmatmul.mubr.msk.bf16.vlgmr.msra.gmra.mrb[0].mxu0 %vm278_vm2, %v1128_v23  ;;  %v827_v26 = vsel %vm282_vm1, %v821_v25, 0  ;;  %v819_v27 = vpop.permute.xlu1 %818 }
  0xa9   : > { %v822_v28 = vsel %vm820_vm7, %v817_v24, %v819_v27  ;;  %864 = vmatprep.mubr.bf16.mxu0 %v1206_v6 }
  0xaa   : > { %1132 = vmatprep.subr.msk.bf16.mxu0 %vm282_vm1, %v822_v28  ;;  %v491_v29 = vpop.permute.xlu0 %490 }
  0xab   : > { %833 = vmatpush1.bf16.msra.mxu0 %v827_v26 }
  0xac   : > { %v493_v30 = vpop.permute.xlu1 %492 }
  0xad   : > { %v497_v31 = vsel %vm496_vm8, %v491_v29, %v493_v30 }
  0xae   : > { %v503_v33 = vsel %vm282_vm1, %v497_v31, 0  ;;  %v495_v34 = vpop.permute.xlu0 %494 }
  0xaf   : > { %v498_v35 = vsel %vm496_vm8, %v493_v30, %v495_v34 }
  0xb0   : > { %1118 = vmatmul.mubr.msk.bf16.vlgmr.msra.gmra.mrb[0].mxu1 %vm278_vm2, %v1116_v32  ;;  %v896_v36 = vpop.permute.xlu1 %895  ;;  %1120 = vmatprep.subr.msk.bf16.mxu1 %vm282_vm1, %v498_v35 }
  0xb1   : > { %509 = vmatpush1.bf16.msra.mxu1 %v503_v33  ;;  %540 = vmatprep.mubr.bf16.mxu1 %v1206_v6 }
  0xb2   : > { %v898_v38 = vpop.permute.xlu0 %897 }
  0xb3   : > { %v902_v39 = vsel %vm901_vm9, %v896_v36, %v898_v38 }
  0xb4   : > { %1133 = vmatmul.mubr.msk.bf16.vlgmr.msra.gmra.mrb[0].mxu0 %vm278_vm2, %v1131_v37  ;;  %v908_v40 = vsel %vm282_vm1, %v902_v39, 0  ;;  %v900_v41 = vpop.permute.xlu1 %899 }
  0xb5   : > { %v903_v42 = vsel %vm901_vm9, %v898_v38, %v900_v41  ;;  %945 = vmatprep.mubr.bf16.mxu0 %v1206_v6  ;;  %v958_v6 = vld [vmem:[%s1375_s2] sm:$0x3] }
  0xb6   : > { %1135 = vmatprep.subr.msk.bf16.mxu0 %vm282_vm1, %v903_v42  ;;  %v963_v51 = vrot.slane %v958_v6, %v962_v45  ;;  %v967_v53 = vrot.slane %v958_v6, %v966_v47 }
  0xb7   : > { %914 = vmatpush1.bf16.msra.mxu0 %v908_v40 }
  0xbc   : > { %1121 = vmatmul.mubr.msk.bf16.vlgmr.msra.gmra.mrb[0].mxu1 %vm278_vm2, %v1119_v43 }
  0xc0   : > { %1136 = vmatmul.mubr.msk.bf16.vlgmr.msra.gmra.mrb[0].mxu0 %vm278_vm2, %v1134_v44 }
 0x18f   : > { %v542_v46 = vpop.f32.mrb[0].mxu1 }
 0x190   : > { %v544_v48 = vpop.f32.mrb[1].mxu1 }
 0x191   : > { %v546_v49 = vpop.f32.mrb[2].mxu1 }
 0x192   : > { %v547_v50 = vpop.f32.mrb[3].mxu1 }
 0x193   : > { %v947_v52 = vpop.f32.mrb[0].mxu0 }
 0x194   : > { %v1140_v54 = vadd.f32 %v947_v52, %v542_v46  ;;  %v949_v55 = vpop.f32.mrb[1].mxu0 }
 0x195   : > { %v1141_v56 = vadd.f32 %v949_v55, %v544_v48  ;;  %v951_v57 = vpop.f32.mrb[2].mxu0 }
 0x196   : > { %956 = vst [vmem:[%s237_s7] sm:$0xff] %v1140_v54  ;;  %v952_v58 = vpop.f32.mrb[3].mxu0  ;;  %v970_v59 = vmul.f32 %v1140_v54, %v963_v51 }
 0x197   : > { %957 = vst [vmem:[%s237_s7 + $0x8] sm:$0xff] %v1141_v56  ;;  %v971_v3 = vmul.f32 %v1141_v56, %v967_v53 }
 0x198   : > { %v977_v60 = vmul.f32 %v1140_v54, %v970_v59 }
 0x199   : > { %v972_v61 = vadd.f32 %v971_v3, %v970_v59  ;;  %v978_v62 = vmul.f32 %v1141_v56, %v971_v3 }
 0x19b   : > { %973 = vadd.xlane.f32.xlu0 %v972_v61  ;;  %v979_v63 = vadd.f32 %v978_v62, %v977_v60 }
 0x19d   : > { %980 = vadd.xlane.f32.xlu1 %v979_v63 }
 0x228   : > { %v974_v0 = vpop.xlane.xlu0 %973 }
 0x229   : > { %976 = vst.msk [vmem:[%s241_s11] sm:$0xff] %vm975_vm10, %v974_v0 }
 0x22a   : > { %v981_v1 = vpop.xlane.xlu1 %980 }
 0x22b   : > { %982 = vst.msk [vmem:[%s245_s14] sm:$0xff] %vm975_vm10, %v981_v1 }
 0x22c PF: > { %s16_s18 = sadd.s32 1, %s1203_s18  }
 0x22d   : > { %p13_p4 = scmp.ge.s32.totalorder %s16_s18, 4  }
 0x22f   :  { %15 = sbr.rel (!%p13_p4) target bundleno = 1 (0x1), region = 94 }

</bundles_post_ra>
